<compile_context>
chip_gen: v7x
topology: tpu7x:2x2x1
jax: 0.10.0
libtpu: 0.0.40
codegen_flags: <defaults>
</compile_context>

<pallas_src>
import jax
import jax.numpy as jnp
import numpy as np
from jax.experimental import pallas as pl
from jax.experimental.pallas import tpu as pltpu

N_USER = 4
N_ANT = 4
IN_FEATURES = N_USER + N_ANT - 1   # 7
IN_PAD = 8                         # 7 features + 1 ones row (fc0 bias folded in)
HIDDEN_SIZE = 60
HIDDEN_HALF = HIDDEN_SIZE // 2     # 30
CLASSES_NUM = 2
OUT_PAD = 8                        # logits padded to a full 8-sublane store

_LANE = 128
_MAX_TILE = 512                    # vreg-pressure cap (h0 (60,512) f32 ~ 32 vregs)


def _meta_deep_sic_kernel(y_ref, w0_ref, w1_ref, b1_ref, w2_ref, b2_ref, out_ref):
    """3-layer MLP on one (user, batch-tile) block, feature-major layout."""
    x = y_ref[...]                                                   # (8, TB); row 7 = ones

    # fc0 + sigmoid (bias folded into w0 as the 8th input column): (60,8)@(8,TB)
    h0 = jax.nn.sigmoid(
        jnp.dot(w0_ref[...], x, preferred_element_type=jnp.float32))            # (60, TB)

    # fc1 + relu: (30,60)@(60,TB)
    h1 = jnp.maximum(
        jnp.dot(w1_ref[...], h0, preferred_element_type=jnp.float32)
        + b1_ref[...], 0.0)                                                      # (30, TB)

    # fc2 (logits, rows 0-1; rows 2-7 are zero-padded weights/bias): (8,30)@(30,TB)
    out_ref[...] = (
        jnp.dot(w2_ref[...], h1, preferred_element_type=jnp.float32)
        + b2_ref[...]).astype(out_ref.dtype)                                     # (8, TB)


def _num_tensorcores():
    """2 on v7x (megacore split helps), 1 on v5e/v6e (grid is a serial loop)."""
    try:
        kind = jax.devices()[0].device_kind.lower()
        if "v7" in kind:
            return 2
    except Exception:
        pass
    return 1


def _pick_batch_tile(batch, n_users):
    """Lane-aligned batch tile, capped for vreg pressure, generation-aware."""
    covered = _LANE * pl.cdiv(batch, _LANE)          # lane-aligned cover of B
    tile = min(_MAX_TILE, covered)
    # v7x (2 TCs): make sure there are >= 2 parallel grid steps overall so both
    # TensorCores get one big chunk each.  On v5e/v6e keep a single big step.
    if _num_tensorcores() >= 2 and n_users * pl.cdiv(covered, tile) < 2 and covered > _LANE:
        tile = min(_MAX_TILE, max(_LANE, _LANE * pl.cdiv(covered // 2, _LANE)))
    return tile


def meta_deep_sic_forward_stacked(y, var):
    """Fused multi-user forward: one pallas_call for all DeepSIC user detectors.

    y:   (U, B, IN_FEATURES)  per-user inputs
    var: [W0, b0, W1, b1, W2, b2], each with a leading user dim U, PyTorch layout
         (W: (out, in), b: (out,)).
    Returns (U, B, CLASSES_NUM) logits.
    """
    w0, b0, w1, b1, w2, b2 = (jnp.asarray(v, jnp.float32) for v in var)
    y = jnp.asarray(y, jnp.float32)
    U, B, _ = y.shape

    tile = _pick_batch_tile(B, U)
    grid_b = pl.cdiv(B, tile)
    B_pad = tile * grid_b

    # Feature-major relayout + ones row (fc0 bias fold) + batch pad, one copy:
    # (U, B, 7) -> (U, 8, B_pad).  Padded batch columns are harmless & dropped.
    y_aug = jnp.concatenate([y, jnp.ones((U, B, 1), jnp.float32)], axis=-1)
    yT = jnp.pad(y_aug, ((0, 0), (0, B_pad - B), (0, 0))).transpose(0, 2, 1)

    # fc0 bias folded into the weight as an 8th input column: (U, 60, 8).
    w0a = jnp.concatenate([w0, b0[:, :, None]], axis=-1)
    b1c = b1[:, :, None]                                               # (U, 30, 1)
    # fc2 padded 2 -> 8 output rows so stores are full 8-sublane tiles.
    w2p = jnp.pad(w2, ((0, 0), (0, OUT_PAD - CLASSES_NUM), (0, 0)))    # (U, 8, 30)
    b2p = jnp.pad(b2, ((0, 0), (0, OUT_PAD - CLASSES_NUM)))[:, :, None]  # (U, 8, 1)

    user_const = lambda u, i: (u, 0, 0)   # weights resident across batch steps

    flops = 2 * U * B_pad * (IN_PAD * HIDDEN_SIZE
                             + HIDDEN_SIZE * HIDDEN_HALF
                             + HIDDEN_HALF * OUT_PAD)
    weight_bytes = 4 * (w0a.size + w1.size + b1c.size + w2p.size + b2p.size)
    bytes_accessed = 4 * U * B_pad * (IN_PAD + OUT_PAD) + weight_bytes

    out = pl.pallas_call(
        _meta_deep_sic_kernel,
        out_shape=jax.ShapeDtypeStruct((U, OUT_PAD, B_pad), jnp.float32),
        grid_spec=pltpu.PrefetchScalarGridSpec(
            num_scalar_prefetch=0,
            grid=(U, grid_b),
            in_specs=[
                pl.BlockSpec((None, IN_PAD, tile), lambda u, i: (u, 0, i)),
                pl.BlockSpec((None, HIDDEN_SIZE, IN_PAD), user_const),
                pl.BlockSpec((None, HIDDEN_HALF, HIDDEN_SIZE), user_const),
                pl.BlockSpec((None, HIDDEN_HALF, 1), user_const),
                pl.BlockSpec((None, OUT_PAD, HIDDEN_HALF), user_const),
                pl.BlockSpec((None, OUT_PAD, 1), user_const),
            ],
            out_specs=pl.BlockSpec((None, OUT_PAD, tile), lambda u, i: (u, 0, i)),
        ),
        compiler_params=pltpu.CompilerParams(
            dimension_semantics=("parallel", "parallel")),
        cost_estimate=pl.CostEstimate(
            flops=flops,
            transcendentals=U * B_pad * HIDDEN_SIZE,
            bytes_accessed=bytes_accessed),
    )(yT, w0a, w1, b1c, w2p, b2p)

    # (U, 8, B_pad) -> (U, B, 2): drop zero rows + batch padding, back to
    # the PyTorch (batch, classes) convention.
    return out[:, :CLASSES_NUM, :B].transpose(0, 2, 1)


def meta_deep_sic_forward(y, var):
    """PyTorch-equivalent single-detector forward.

    y: (B, IN_FEATURES, 1) or (B, IN_FEATURES); var = [W0, b0, W1, b1, W2, b2].
    Returns (B, CLASSES_NUM) logits.
    """
    y = jnp.asarray(y, jnp.float32)
    if y.ndim == 3:
        y = jnp.squeeze(y, axis=-1)
    var_stacked = [jnp.asarray(v, jnp.float32)[None] for v in var]
    return meta_deep_sic_forward_stacked(y[None], var_stacked)[0]


def _reference_forward(y, var):
    """Pure-JAX reference matching the PyTorch module exactly."""
    w0, b0, w1, b1, w2, b2 = var
    x = jnp.squeeze(y, axis=-1) if y.ndim == 3 else y
    h0 = jax.nn.sigmoid(x @ w0.T + b0)
    h1 = jnp.maximum(h0 @ w1.T + b1, 0.0)
    return h1 @ w2.T + b2


def _init_params(key):
    """Deterministic nn.Linear-style init (uniform +/- 1/sqrt(fan_in))."""
    ks = jax.random.split(key, 6)

    def linear(kw, kb, fan_in, fan_out):
        bound = 1.0 / np.sqrt(fan_in)
        w = jax.random.uniform(kw, (fan_out, fan_in), jnp.float32, -bound, bound)
        b = jax.random.uniform(kb, (fan_out,), jnp.float32, -bound, bound)
        return w, b

    w0, b0 = linear(ks[0], ks[1], IN_FEATURES, HIDDEN_SIZE)
    w1, b1 = linear(ks[2], ks[3], HIDDEN_SIZE, HIDDEN_HALF)
    w2, b2 = linear(ks[4], ks[5], HIDDEN_HALF, CLASSES_NUM)
    return [w0, b0, w1, b1, w2, b2]


if __name__ == "__main__":
    key = jax.random.PRNGKey(0)
    k_y, k_p, k_y2, k_p2 = jax.random.split(key, 4)

    # --- single-detector path (PyTorch signature), non-aligned batch ----------
    batch = 300
    y = jax.random.normal(k_y, (batch, IN_FEATURES, 1), dtype=jnp.float32)
    var = _init_params(k_p)

    out = jax.block_until_ready(meta_deep_sic_forward(y, var))
    ref = jax.block_until_ready(_reference_forward(y, var))
    np.testing.assert_allclose(np.asarray(out), np.asarray(ref),
                               rtol=1e-5, atol=2e-5)

    # --- fused multi-user path (all DeepSIC detectors in one pallas_call) -----
    n_users = N_USER
    y_stacked = jax.random.normal(k_y2, (n_users, batch, IN_FEATURES),
                                  dtype=jnp.float32)
    per_user = [_init_params(k) for k in jax.random.split(k_p2, n_users)]
    var_stacked = [jnp.stack([pu[j] for pu in per_user]) for j in range(6)]

    out_s = jax.block_until_ready(
        meta_deep_sic_forward_stacked(y_stacked, var_stacked))
    ref_s = jnp.stack([
        _reference_forward(y_stacked[u], [v[u] for v in var_stacked])
        for u in range(n_users)])
    np.testing.assert_allclose(np.asarray(out_s), np.asarray(ref_s),
                               rtol=1e-5, atol=2e-5)

    print("KERNEL_OK")
</pallas_src>

<mosaic_0001>
module attributes {stable_mosaic.version = 11 : i64} {
  func.func @_meta_deep_sic_kernel(%arg0: i32, %arg1: i32, %arg2: memref<1x8x384xf32, #tpu.memory_space<vmem>>, %arg3: memref<1x60x8xf32, #tpu.memory_space<vmem>>, %arg4: memref<1x30x60xf32, #tpu.memory_space<vmem>>, %arg5: memref<1x30x1xf32, #tpu.memory_space<vmem>>, %arg6: memref<1x8x30xf32, #tpu.memory_space<vmem>>, %arg7: memref<1x8x1xf32, #tpu.memory_space<vmem>>, %arg8: memref<1x8x384xf32, #tpu.memory_space<vmem>>) attributes {dimension_semantics = [#tpu.dimension_semantics<parallel>, #tpu.dimension_semantics<parallel>], iteration_bounds = array<i64: 1, 1>, scalar_prefetch = 0 : i64, scratch_operands = 0 : i64, tpu.core_type = #tpu.core_type<tc>, window_params = [{transform_indices = @transform_0, window_bounds = array<i64: 1, 8, 384>}, {transform_indices = @transform_1, window_bounds = array<i64: 1, 60, 8>}, {transform_indices = @transform_2, window_bounds = array<i64: 1, 30, 60>}, {transform_indices = @transform_3, window_bounds = array<i64: 1, 30, 1>}, {transform_indices = @transform_4, window_bounds = array<i64: 1, 8, 30>}, {transform_indices = @transform_5, window_bounds = array<i64: 1, 8, 1>}, {transform_indices = @transform_6, window_bounds = array<i64: 1, 8, 384>}]} {
    %c0 = arith.constant 0 : index
    %c0_0 = arith.constant 0 : index
    %c0_1 = arith.constant 0 : index
    %0 = vector.load %arg2[%c0, %c0_0, %c0_1] : memref<1x8x384xf32, #tpu.memory_space<vmem>>, vector<1x8x384xf32>
    %1 = vector.shape_cast %0 : vector<1x8x384xf32> to vector<8x384xf32>
    %c0_2 = arith.constant 0 : index
    %c0_3 = arith.constant 0 : index
    %c0_4 = arith.constant 0 : index
    %2 = vector.load %arg3[%c0_2, %c0_3, %c0_4] : memref<1x60x8xf32, #tpu.memory_space<vmem>>, vector<1x60x8xf32>
    %3 = vector.shape_cast %2 : vector<1x60x8xf32> to vector<60x8xf32>
    %cst = arith.constant dense<0.000000e+00> : vector<60x384xf32>
    %4 = tpu.matmul %3, %1, %cst {dimension_numbers = #tpu.dot_dimension_numbers<[1], [0], [0], [1], [0, 0, 1, 1], [], []>} : vector<60x8xf32>, vector<8x384xf32>, vector<60x384xf32> -> vector<60x384xf32>
    %5 = arith.negf %4 : vector<60x384xf32>
    %6 = math.exp %5 : vector<60x384xf32>
    %cst_5 = arith.constant 1.000000e+00 : f32
    %7 = vector.broadcast %cst_5 : f32 to vector<60x384xf32>
    %8 = arith.addf %7, %6 : vector<60x384xf32>
    %9 = arith.divf %7, %8 : vector<60x384xf32>
    %c0_6 = arith.constant 0 : index
    %c0_7 = arith.constant 0 : index
    %c0_8 = arith.constant 0 : index
    %10 = vector.load %arg4[%c0_6, %c0_7, %c0_8] : memref<1x30x60xf32, #tpu.memory_space<vmem>>, vector<1x30x60xf32>
    %11 = vector.shape_cast %10 : vector<1x30x60xf32> to vector<30x60xf32>
    %cst_9 = arith.constant dense<0.000000e+00> : vector<30x384xf32>
    %12 = tpu.matmul %11, %9, %cst_9 {dimension_numbers = #tpu.dot_dimension_numbers<[1], [0], [0], [1], [0, 0, 1, 1], [], []>} : vector<30x60xf32>, vector<60x384xf32>, vector<30x384xf32> -> vector<30x384xf32>
    %c0_10 = arith.constant 0 : index
    %c0_11 = arith.constant 0 : index
    %c0_12 = arith.constant 0 : index
    %13 = vector.load %arg5[%c0_10, %c0_11, %c0_12] : memref<1x30x1xf32, #tpu.memory_space<vmem>>, vector<1x30x1xf32>
    %14 = vector.shape_cast %13 : vector<1x30x1xf32> to vector<30x1xf32>
    %15 = vector.broadcast %14 : vector<30x1xf32> to vector<30x384xf32>
    %16 = arith.addf %12, %15 : vector<30x384xf32>
    %cst_13 = arith.constant 0.000000e+00 : f32
    %17 = vector.broadcast %cst_13 : f32 to vector<30x384xf32>
    %18 = arith.maximumf %16, %17 : vector<30x384xf32>
    %c0_14 = arith.constant 0 : index
    %c0_15 = arith.constant 0 : index
    %c0_16 = arith.constant 0 : index
    %19 = vector.load %arg6[%c0_14, %c0_15, %c0_16] : memref<1x8x30xf32, #tpu.memory_space<vmem>>, vector<1x8x30xf32>
    %20 = vector.shape_cast %19 : vector<1x8x30xf32> to vector<8x30xf32>
    %cst_17 = arith.constant dense<0.000000e+00> : vector<8x384xf32>
    %21 = tpu.matmul %20, %18, %cst_17 {dimension_numbers = #tpu.dot_dimension_numbers<[1], [0], [0], [1], [0, 0, 1, 1], [], []>} : vector<8x30xf32>, vector<30x384xf32>, vector<8x384xf32> -> vector<8x384xf32>
    %c0_18 = arith.constant 0 : index
    %c0_19 = arith.constant 0 : index
    %c0_20 = arith.constant 0 : index
    %22 = vector.load %arg7[%c0_18, %c0_19, %c0_20] : memref<1x8x1xf32, #tpu.memory_space<vmem>>, vector<1x8x1xf32>
    %23 = vector.shape_cast %22 : vector<1x8x1xf32> to vector<8x1xf32>
    %24 = vector.broadcast %23 : vector<8x1xf32> to vector<8x384xf32>
    %25 = arith.addf %21, %24 : vector<8x384xf32>
    %c0_21 = arith.constant 0 : index
    %c0_22 = arith.constant 0 : index
    %c0_23 = arith.constant 0 : index
    %26 = vector.load %arg8[%c0_21, %c0_22, %c0_23] : memref<1x8x384xf32, #tpu.memory_space<vmem>>, vector<1x8x384xf32>
    %27 = vector.shape_cast %26 : vector<1x8x384xf32> to vector<8x384xf32>
    %28 = vector.shape_cast %25 : vector<8x384xf32> to vector<1x8x384xf32>
    tpu.vector_store %arg8[%c0_21, %c0_22, %c0_23], %28 {strides = array<i32>} : memref<1x8x384xf32, #tpu.memory_space<vmem>>, vector<1x8x384xf32>,
    return
  }
  func.func @transform_0(%arg0: i32, %arg1: i32) -> (i32, i32, i32) {
    %c0_i32 = arith.constant 0 : i32
    %c0_i32_0 = arith.constant 0 : i32
    return %arg0, %c0_i32, %arg1 : i32, i32, i32
  }
  func.func @transform_1(%arg0: i32, %arg1: i32) -> (i32, i32, i32) {
    %c0_i32 = arith.constant 0 : i32
    %c0_i32_0 = arith.constant 0 : i32
    %c0_i32_1 = arith.constant 0 : i32
    return %arg0, %c0_i32, %c0_i32_0 : i32, i32, i32
  }
  func.func @transform_2(%arg0: i32, %arg1: i32) -> (i32, i32, i32) {
    %c0_i32 = arith.constant 0 : i32
    %c0_i32_0 = arith.constant 0 : i32
    %c0_i32_1 = arith.constant 0 : i32
    return %arg0, %c0_i32, %c0_i32_0 : i32, i32, i32
  }
  func.func @transform_3(%arg0: i32, %arg1: i32) -> (i32, i32, i32) {
    %c0_i32 = arith.constant 0 : i32
    %c0_i32_0 = arith.constant 0 : i32
    %c0_i32_1 = arith.constant 0 : i32
    return %arg0, %c0_i32, %c0_i32_0 : i32, i32, i32
  }
  func.func @transform_4(%arg0: i32, %arg1: i32) -> (i32, i32, i32) {
    %c0_i32 = arith.constant 0 : i32
    %c0_i32_0 = arith.constant 0 : i32
    %c0_i32_1 = arith.constant 0 : i32
    return %arg0, %c0_i32, %c0_i32_0 : i32, i32, i32
  }
  func.func @transform_5(%arg0: i32, %arg1: i32) -> (i32, i32, i32) {
    %c0_i32 = arith.constant 0 : i32
    %c0_i32_0 = arith.constant 0 : i32
    %c0_i32_1 = arith.constant 0 : i32
    return %arg0, %c0_i32, %c0_i32_0 : i32, i32, i32
  }
  func.func @transform_6(%arg0: i32, %arg1: i32) -> (i32, i32, i32) {
    %c0_i32 = arith.constant 0 : i32
    %c0_i32_0 = arith.constant 0 : i32
    return %arg0, %c0_i32, %arg1 : i32, i32, i32
  }
}

</mosaic_0001>

<bundles_post_ra>
// kernel: tpu_custom_call.1
= control target key start
LH: loop header
LB: loop body
LE: loop exit
PB: predicated region body
PF: predicated region fallthrough
CT: control target
= control target key end

     0   :  { %vm35_vm0 = vcmask 64512   ;;  %v1150_v5 = vmov 0.0   ;;  %s1340_s0 = inlined_call_operand.vmem [shape: f32[1,8,384], index: 0, kind: input, shape index: {}]   ;;  %s1341_s1 = inlined_call_operand.vmem [shape: f32[1,60,8], index: 1, kind: input, shape index: {}]   ;;  %s1342_s2 = inlined_call_operand.vmem [shape: f32[1,30,60], index: 2, kind: input, shape index: {}]   ;;  %s1343_s3 = inlined_call_operand.vmem [shape: f32[1,30,1], index: 3, kind: input, shape index: {}]   ;;  %s1344_s4 = inlined_call_operand.vmem [shape: f32[1,8,30], index: 4, kind: input, shape index: {}]   ;;  %s1345_s5 = inlined_call_operand.vmem [shape: f32[1,8,1], index: 5, kind: input, shape index: {}]   ;;  %s1346_s6 = inlined_call_operand.hbm [shape: f32[1,8,384], index: 6, kind: output, shape index: {}]  }
   0x1   :  { %v25_v0 = vld [vmem:[%s1340_s0 + $0x8] sm:$0xff]  ;;  %v24_v1 = vld [vmem:[%s1340_s0] sm:$0xff]  ;;  %v34_v3 = vld [vmem:[%s1341_s1 + $0x38] sm:$0xf]  ;;  %124 = vmatprep.mubr.f32.mxu0 %v1150_v5  ;;  %166 = vmatprep.mubr.f32.mxu1 %v1150_v5 }
   0x2   :  { %60 = vmatprep.subr.mxu0 %v25_v0  ;;  %1020 = vmatprep.subr.mxu1 %v25_v0  ;;  %v27_v2 = vld [vmem:[%s1341_s1] sm:$0xff]  ;;  %v26_v4 = vld [vmem:[%s1340_s0 + $0x10] sm:$0xff] }
   0x3   :  { %61 = vmatpush1.msra.mxu0 %v24_v1  ;;  %1021 = vmatpush1.msra.mxu1 %v24_v1 }
   0x4   :  { %11 = vsyncpa [#allocation3], 0  ;;  %838 = vmatmul.mubr.msk.f32.vlgmr.msra.gmra.mrb[0].mxu0 %vm35_vm0, %v27_v2  ;;  %845 = vmatmul.mubr.msk.f32.vlgmr.msra.gmra.mrb[0].mxu1 %vm35_vm0, %v34_v3  ;;  %v28_v6 = vld [vmem:[%s1341_s1 + $0x8] sm:$0xff]  ;;  %v29_v7 = vld [vmem:[%s1341_s1 + $0x10] sm:$0xff]  ;;  %vm450_vm1 = vcmask 490496   ;;  %v1151_v15 = vmov 0  }
   0x5   :  { %920 = vmatprep.subr.mxu1 %v26_v4  ;;  %130 = vmatprep.mubr.f32.mxu0 %v1150_v5  ;;  %v30_v8 = vld [vmem:[%s1341_s1 + $0x18] sm:$0xff]  ;;  %v31_v9 = vld [vmem:[%s1341_s1 + $0x20] sm:$0xff]  ;;  %v32_v10 = vld [vmem:[%s1341_s1 + $0x28] sm:$0xff]  ;;  %vm463_vm2 = vcmask 1043456   ;;  %vm1152_vm3 = vmmov 1   ;;  %vm1154_vm5 = vmmov 0  }
   0x6   :  { %921 = vmatpush3.msra.mxu1 %v26_v4  ;;  %922 = vmatprep.mubr.msk.f32.mxu1 %vm35_vm0, %v27_v2  ;;  %v33_v11 = vld [vmem:[%s1341_s1 + $0x30] sm:$0xff]  ;;  %v1252_v12 = vld [vmem:[%s1342_s2] sm:$0xff]  ;;  %v427_v16 = vld [vmem:[%s1343_s3 + $0x8] sm:$0xff]  ;;  %vm670_vm6 = vcmask 1045504   ;;  %vm666_vm8 = vcmask 244736  }
   0x7   :  { %v426_v13 = vld [vmem:[%s1343_s3] sm:$0xff]  ;;  %v428_v14 = vld [vmem:[%s1343_s3 + $0x10] sm:$0xff]  ;;  %1028 = vset.pattern.permute.xlu0 %v1151_v15  ;;  %1029 = vset.pattern.permute.xlu1 %v1151_v15  ;;  %v429_v17 = vld [vmem:[%s1343_s3 + $0x18] sm:$0x3f] }
   0x8   :  { %839 = vmatmul.mubr.msk.f32.gmra.mrb[2].mxu0 %vm35_vm0, %v28_v6  ;;  %923 = vmatmul.mubr.msk.f32.vlgmr.msra.gmra.mrb[2].mxu1 %vm35_vm0, %v28_v6  ;;  %v660_v18 = vld [vmem:[%s1345_s5] sm:$0xff]  ;;  %vm1277_vm4 = vmpackc.low %vm463_vm2, %vm1152_vm3 }
   0x9   :  { %136 = vmatprep.mubr.f32.mxu0 %v1150_v5  ;;  %925 = vmatprep.mubr.msk.f32.mxu1 %vm35_vm0, %v29_v7  ;;  %vm1313_vm7 = vmpackc.low %vm670_vm6, %vm1152_vm3 }
   0xa   :  { %432 = vperm.xlu0 %1028, %v426_v13   ;;  %442 = vperm.xlu1 %1029, %v428_v14  }
   0xc   :  { %840 = vmatmul.mubr.msk.f32.gmra.mrb[4].mxu0 %vm35_vm0, %v29_v7  ;;  %926 = vmatmul.mubr.msk.f32.gmra.mrb[4].mxu1 %vm35_vm0, %v30_v8 }
   0xd   :  { %142 = vmatprep.mubr.f32.mxu0 %v1150_v5  ;;  %928 = vmatprep.mubr.msk.f32.mxu1 %vm35_vm0, %v31_v9 }
   0xe   :  { %437 = vperm.xlu0 %1028, %v427_v16   ;;  %447 = vperm.xlu1 %1029, %v429_v17  }
  0x10   :  { %841 = vmatmul.mubr.msk.f32.gmra.mrb[6].mxu0 %vm35_vm0, %v30_v8  ;;  %929 = vmatmul.mubr.msk.f32.gmra.mrb[6].mxu1 %vm35_vm0, %v32_v10 }
  0x11   :  { %148 = vmatprep.mubr.f32.mxu0 %v1150_v5  ;;  %931 = vmatprep.mubr.msk.f32.mxu1 %vm35_vm0, %v33_v11 }
  0x12   :  { %663 = vperm.xlu0 %1028, %v660_v18  }
  0x14   :  { %842 = vmatmul.mubr.msk.f32.gmra.mrb[8].mxu0 %vm35_vm0, %v31_v9  ;;  %932 = vmatmul.mubr.msk.f32.gmra.mrb[8].mxu1 %vm35_vm0, %v34_v3 }
  0x15   :  { %154 = vmatprep.mubr.f32.mxu0 %v1150_v5  ;;  %537 = vmatprep.mubr.f32.mxu1 %v1150_v5 }
  0x18   :  { %843 = vmatmul.mubr.msk.f32.gmra.mrb[10].mxu0 %vm35_vm0, %v32_v10 }
  0x19   :  { %160 = vmatprep.mubr.f32.mxu0 %v1150_v5 }
  0x1c   :  { %844 = vmatmul.mubr.msk.f32.gmra.mrb[12].mxu0 %vm35_vm0, %v33_v11 }
  0x1d   :  { %950 = vmatprep.mubr.msk.f32.mxu0 %vm450_vm1, %v1252_v12 }
  0xd7   :  { %v126_v19 = vpop.f32.mrb[0].mxu0  ;;  %v168_v20 = vpop.f32.mrb[0].mxu1 }
  0xd8   :  { %v854_v21 = vmul.f32 -1.442695, %v126_v19  ;;  %v128_v22 = vpop.f32.mrb[1].mxu0  ;;  %v170_v23 = vpop.f32.mrb[1].mxu1  ;;  %v875_v25 = vmul.f32 -1.442695, %v168_v20 }
  0xd9   :  { %v855_v24 = vmul.f32 -1.442695, %v128_v22  ;;  %v876_v41 = vmul.f32 -1.442695, %v170_v23 }
  0xda   :  { %1030 = vpow2.f32 %v854_v21 }
  0xdb   :  { %1032 = vpow2.f32 %v855_v24  ;;  %v132_v26 = vpop.f32.mrb[2].mxu0  ;;  %v924_v27 = vpop.f32.mrb[2].mxu1 }
  0xdc   :  { %v857_v28 = vmul.f32 -1.442695, %v132_v26  ;;  %v859_v29 = vmul.f32 -1.442695, %v924_v27  ;;  %v134_v30 = vpop.f32.mrb[3].mxu0  ;;  %v239_v31 = vpop.f32.mrb[3].mxu1  ;;  %1034 = vpow2.f32 %v875_v25 }
  0xdd   :  { %v858_v32 = vmul.f32 -1.442695, %v134_v30  ;;  %v856_v33 = vmul.f32 -1.442695, %v239_v31 }
  0xde   :  { %1036 = vpow2.f32 %v857_v28 }
  0xdf   :  { %1038 = vpow2.f32 %v859_v29  ;;  %v138_v34 = vpop.f32.mrb[4].mxu0  ;;  %v927_v35 = vpop.f32.mrb[4].mxu1 }
  0xe0   :  { %1040 = vpow2.f32 %v858_v32  ;;  %v860_v36 = vmul.f32 -1.442695, %v138_v34  ;;  %v865_v37 = vmul.f32 -1.442695, %v927_v35  ;;  %v140_v38 = vpop.f32.mrb[5].mxu0  ;;  %v249_v39 = vpop.f32.mrb[5].mxu1 }
  0xe1   :  { %1042 = vpow2.f32 %v856_v33  ;;  %v862_v40 = vmul.f32 -1.442695, %v249_v39  ;;  %v861_v45 = vmul.f32 -1.442695, %v140_v38 }
  0xe2   :  { %1044 = vpow2.f32 %v860_v36 }
  0xe3   :  { %1046 = vpow2.f32 %v865_v37  ;;  %v144_v42 = vpop.f32.mrb[6].mxu0  ;;  %v930_v43 = vpop.f32.mrb[6].mxu1 }
  0xe4   :  { %v1031_v44 = vpop.eup %1030  ;;  %v863_v46 = vmul.f32 -1.442695, %v144_v42  ;;  %v146_v47 = vpop.f32.mrb[7].mxu0  ;;  %1048 = vpow2.f32 %v862_v40  ;;  %v871_v14 = vmul.f32 -1.442695, %v930_v43 }
  0xe5   :  { %v259_v48 = vpop.f32.mrb[7].mxu1  ;;  %v1033_v49 = vpop.eup %1032  ;;  %v350_v50 = vadd.f32 1.0, %v1031_v44  ;;  %v864_v18 = vmul.f32 -1.442695, %v146_v47 }
  0xe6   :  { %v351_v51 = vadd.f32 1.0, %v1033_v49  ;;  %1050 = vpow2.f32 %v863_v46  ;;  %v1035_v52 = vpop.eup %1034  ;;  %v868_v20 = vmul.f32 -1.442695, %v259_v48 }
  0xe7   :  { %1052 = vpow2.f32 %v876_v41  ;;  %v150_v53 = vpop.f32.mrb[8].mxu0  ;;  %v933_v54 = vpop.f32.mrb[8].mxu1  ;;  %v371_v63 = vadd.f32 1.0, %v1035_v52 }
  0xe8   :  { %v1037_v55 = vpop.eup %1036  ;;  %1054 = vpow2.f32 %v861_v45  ;;  %v152_v56 = vpop.f32.mrb[9].mxu0  ;;  %v866_v22 = vmul.f32 -1.442695, %v150_v53  ;;  %v877_v24 = vmul.f32 -1.442695, %v933_v54 }
  0xe9   :  { %v1039_v57 = vpop.eup %1038  ;;  %1056 = vrcp.f32 %v350_v50  ;;  %v353_v58 = vadd.f32 1.0, %v1037_v55  ;;  %v269_v59 = vpop.f32.mrb[9].mxu1  ;;  %v867_v26 = vmul.f32 -1.442695, %v152_v56 }
  0xea   :  { %v1041_v60 = vpop.eup %1040  ;;  %1058 = vrcp.f32 %v351_v51  ;;  %v355_v61 = vadd.f32 1.0, %v1039_v57  ;;  %v874_v28 = vmul.f32 -1.442695, %v269_v59 }
  0xeb   :  { %v1043_v62 = vpop.eup %1042  ;;  %1060 = vrcp.f32 %v353_v58  ;;  %v354_v0 = vadd.f32 1.0, %v1041_v60  ;;  %v156_v1 = vpop.f32.mrb[10].mxu0 }
  0xec   :  { %v1045_v2 = vpop.eup %1044  ;;  %1062 = vrcp.f32 %v355_v61  ;;  %v352_v3 = vadd.f32 1.0, %v1043_v62  ;;  %v158_v4 = vpop.f32.mrb[11].mxu0  ;;  %v869_v31 = vmul.f32 -1.442695, %v156_v1 }
  0xed   :  { %v1047_v6 = vpop.eup %1046  ;;  %1064 = vrcp.f32 %v354_v0  ;;  %v356_v7 = vadd.f32 1.0, %v1045_v2  ;;  %v870_v33 = vmul.f32 -1.442695, %v158_v4 }
  0xee   :  { %1066 = vrcp.f32 %v352_v3  ;;  %v361_v8 = vadd.f32 1.0, %v1047_v6  ;;  %v1049_v9 = vpop.eup %1048 }
  0xef   :  { %1068 = vrcp.f32 %v371_v63  ;;  %v162_v10 = vpop.f32.mrb[12].mxu0  ;;  %v358_v13 = vadd.f32 1.0, %v1049_v9 }
  0xf0   :  { %v1051_v11 = vpop.eup %1050  ;;  %1070 = vrcp.f32 %v361_v8  ;;  %v164_v15 = vpop.f32.mrb[13].mxu0  ;;  %v872_v36 = vmul.f32 -1.442695, %v162_v10 }
  0xf1   :  { %v1053_v16 = vpop.eup %1052  ;;  %1072 = vrcp.f32 %v356_v7  ;;  %v359_v17 = vadd.f32 1.0, %v1051_v11  ;;  %v873_v39 = vmul.f32 -1.442695, %v164_v15 }
  0xf2   :  { %v1055_v19 = vpop.eup %1054  ;;  %1074 = vrcp.f32 %v358_v13  ;;  %v372_v41 = vadd.f32 1.0, %v1053_v16 }
  0xf3   :  { %v1057_v21 = vpop.eup %1056  ;;  %1076 = vrcp.f32 %v359_v17  ;;  %v357_v43 = vadd.f32 1.0, %v1055_v19 }
  0xf4   :  { %v1059_v23 = vpop.eup %1058  ;;  %1078 = vpow2.f32 %v871_v14 }
  0xf5   :  { %v1061_v25 = vpop.eup %1060  ;;  %1080 = vpow2.f32 %v864_v18 }
  0xf6   :  { %v1063_v27 = vpop.eup %1062  ;;  %1082 = vpow2.f32 %v868_v20  ;;  %v969_v29 = vpack.c.bf16 %v1061_v25, %v1057_v21 }
  0xf7   :  { %v1065_v30 = vpop.eup %1064  ;;  %1084 = vpow2.f32 %v866_v22 }
  0xf8   :  { %v1067_v32 = vpop.eup %1066  ;;  %1086 = vpow2.f32 %v877_v24  ;;  %v967_v34 = vpack.c.bf16 %v1065_v30, %v1059_v23  ;;  %v425_v30 = vld [vmem:[%s1342_s2 + $0x18] sm:$0x3f] }
  0xf9   :  { %v1271_v35 = vpop.eup %1068  ;;  %1088 = vpow2.f32 %v867_v26  ;;  %v985_v37 = vpack.c.bf16 %v1063_v27, %v1067_v32  ;;  %v423_v26 = vld [vmem:[%s1342_s2 + $0x8] sm:$0xff]  ;;  %v443_v32 = vpop.permute.xlu1 %442 }
  0xfa   :  { %v1071_v38 = vpop.eup %1070  ;;  %1090 = vpow2.f32 %v874_v28  ;;  %968 = vmatprep.subr.bf16.mxu1 %v967_v34  ;;  %v424_v28 = vld [vmem:[%s1342_s2 + $0x10] sm:$0xff] }
  0xfb   :  { %v1273_v40 = vpop.eup %1072  ;;  %1092 = vpow2.f32 %v869_v31  ;;  %986 = vmatprep.subr.bf16.mxu0 %v985_v37  ;;  %970 = vmatpush1.bf16.msra.mxu1 %v969_v29  ;;  %v1153_v31 = vmov 0.0|0.0  }
  0xfc   :  { %v1075_v42 = vpop.eup %1074  ;;  %1094 = vpow2.f32 %v870_v33  ;;  %988 = vmatpush3.bf16.msra.mxu0 %v985_v37 }
  0xfd   :  { %v1077_v44 = vpop.eup %1076  ;;  %1096 = vpow2.f32 %v872_v36  ;;  %v989_v45 = vpack.c.bf16 %v1071_v38, %v1075_v42  ;;  %v448_v38 = vpop.permute.xlu1 %447 }
  0xfe   :  { %v1079_v46 = vpop.eup %1078  ;;  %1098 = vpow2.f32 %v873_v39  ;;  %v973_v47 = vpack.c.bf16 %v1077_v44, %v1273_v40 }
  0xff   :  { %v1081_v48 = vpop.eup %1080  ;;  %1100 = vrcp.f32 %v372_v41  ;;  %v367_v49 = vadd.f32 1.0, %v1079_v46  ;;  %990 = vmatprep.subr.bf16.mxu0 %v989_v45 }
 0x100   :  { %v1083_v50 = vpop.eup %1082  ;;  %1102 = vrcp.f32 %v357_v43  ;;  %v360_v51 = vadd.f32 1.0, %v1081_v48  ;;  %992 = vmatpush3.bf16.msra.mxu0 %v989_v45 }
 0x101   :  { %v1085_v52 = vpop.eup %1084  ;;  %1104 = vrcp.f32 %v367_v49  ;;  %v364_v53 = vadd.f32 1.0, %v1083_v50 }
 0x102   :  { %v1087_v54 = vpop.eup %1086  ;;  %1106 = vrcp.f32 %v360_v51  ;;  %v362_v55 = vadd.f32 1.0, %v1085_v52 }
 0x103   :  { %v1089_v56 = vpop.eup %1088  ;;  %1108 = vrcp.f32 %v364_v53  ;;  %v373_v57 = vadd.f32 1.0, %v1087_v54 }
 0x104   :  { %v1091_v58 = vpop.eup %1090  ;;  %1110 = vrcp.f32 %v362_v55  ;;  %v363_v59 = vadd.f32 1.0, %v1089_v56 }
 0x105   :  { %v1093_v60 = vpop.eup %1092  ;;  %1112 = vrcp.f32 %v373_v57  ;;  %v370_v61 = vadd.f32 1.0, %v1091_v58  ;;  %v659_v57 = vld [vmem:[%s1344_s4] sm:$0xff]  ;;  %s1155_s4 = smov [#allocation2]  }
 0x106   :  { %v1095_v62 = vpop.eup %1094  ;;  %1114 = vrcp.f32 %v363_v59  ;;  %v365_v63 = vadd.f32 1.0, %v1093_v60  ;;  %s830_s9 = sshll.u32 %s1155_s4, 4  ;;  %s831_s9 = int_to_ptr.vmem [resolvable:$true] %s830_s9 }
 0x107   :  { %v1097_v0 = vpop.eup %1096  ;;  %1116 = vrcp.f32 %v370_v61  ;;  %v366_v1 = vadd.f32 1.0, %v1095_v62  ;;  %s1126_s10 = scalar_lea.vmem %s831_s9, 384  ;;  %p1131_p1 = scmp.lt.s32.totalorder %s831_s9, %s831_s9 }
 0x108   :  { %v1099_v2 = vpop.eup %1098  ;;  %1118 = vrcp.f32 %v365_v63  ;;  %v368_v3 = vadd.f32 1.0, %v1097_v0  ;;  %p1127_p0 = scmp.ne.s32.totalorder %s831_s9, %s1126_s10  ;;  %p1132_p2 = scmp.lt.s32.totalorder %s1126_s10, %s1126_s10 }
 0x109   :  { %v1101_v4 = vpop.eup %1100  ;;  %1120 = vrcp.f32 %v366_v1  ;;  %v369_v6 = vadd.f32 1.0, %v1099_v2 }
 0x10a   :  { %v1103_v7 = vpop.eup %1102  ;;  %1122 = vrcp.f32 %v368_v3  ;;  %p1133_p3 = por %p1132_p2, %p1131_p1 }
 0x10b   :  { %v1105_v8 = vpop.eup %1104  ;;  %1124 = vrcp.f32 %v369_v6 }
 0x10c   :  { %v1107_v9 = vpop.eup %1106  ;;  %p1134_p4 = pnand %p1133_p3, %p1127_p0 }
 0x10d   :  { %v1109_v10 = vpop.eup %1108  ;;  %v971_v11 = vpack.c.bf16 %v1107_v9, %v1103_v7 }
 0x10e   :  { %v1111_v13 = vpop.eup %1110  ;;  %v993_v14 = vpack.c.bf16 %v1105_v8, %v1109_v10 }
 0x10f   :  { %v1113_v15 = vpop.eup %1112  ;;  %972 = vmatprep.subr.bf16.mxu1 %v971_v11 }
 0x110   :  { %v1115_v16 = vpop.eup %1114  ;;  %994 = vmatprep.subr.bf16.mxu0 %v993_v14  ;;  %974 = vmatpush1.bf16.msra.mxu1 %v973_v47 }
 0x111   :  { %v1117_v17 = vpop.eup %1116  ;;  %996 = vmatpush3.bf16.msra.mxu0 %v993_v14 }
 0x112   :  { %v1119_v19 = vpop.eup %1118  ;;  %v997_v20 = vpack.c.bf16 %v1113_v15, %v1117_v17 }
 0x113   :  { %v1121_v21 = vpop.eup %1120  ;;  %v977_v22 = vpack.c.bf16 %v1119_v19, %v1111_v13 }
 0x114   :  { %v1123_v23 = vpop.eup %1122  ;;  %999 = vmatprep.subr.msk.bf16.mxu0 %vm1277_vm4, %v997_v20  ;;  %v975_v24 = vpack.c.bf16 %v1121_v21, %v1115_v16 }
 0x115   :  { %v1125_v25 = vpop.eup %1124  ;;  %1002 = vmatpush3.bf16.msk.msra.mxu0 %vm1277_vm4, %v997_v20  ;;  %v982_v27 = vpack.c.bf16 %v1271_v35, %v1123_v23 }
 0x116   :  { %976 = vmatprep.subr.bf16.mxu1 %v975_v24  ;;  %v979_v29 = vpack.c.bf16 %v1101_v4, %v1125_v25  ;;  %1013 = vmatprep.subr.bf16.mxu0 %v1153_v31 }
 0x117   :  { %978 = vmatpush1.bf16.msra.mxu1 %v977_v22 }
 0x118   :  { %951 = vmatmul.mubr.msk.f32.vlgmr.msra.gmra.mrb[14].mxu0 %vm450_vm1, %v423_v26  ;;  %981 = vmatprep.subr.msk.bf16.mxu1 %vm1277_vm4, %v979_v29 }
 0x119   :  { %953 = vmatprep.mubr.msk.f32.mxu0 %vm450_vm1, %v424_v28 }
 0x11b   :  { %984 = vmatpush1.bf16.msk.msra.mxu1 %vm1277_vm4, %v982_v27 }
 0x11c   :  { %954 = vmatmul.mubr.msk.f32.gmra.mrb[16].mxu0 %vm450_vm1, %v425_v30 }
 0x11d   :  { %964 = vmatprep.mubr.msk.f32.mxu0 %vm1154_vm5, %v1150_v5 }
 0x11e   :  { %880 = vmatmul.mubr.msk.f32.vlgmr.msra.gmra.mrb[10].mxu1 %vm450_vm1, %v1252_v12  ;;  %v433_v12 = vpop.permute.xlu0 %432 }
 0x11f   :  { %543 = vmatprep.mubr.f32.mxu1 %v1150_v5 }
 0x122   :  { %881 = vmatmul.mubr.msk.f32.gmra.mrb[12].mxu1 %vm450_vm1, %v423_v26  ;;  %v438_v33 = vpop.permute.xlu0 %437 }
 0x123   :  { %549 = vmatprep.mubr.f32.mxu1 %v1150_v5 }
 0x126   :  { %882 = vmatmul.mubr.msk.f32.gmra.mrb[14].mxu1 %vm450_vm1, %v424_v28  ;;  %v664_v16 = vpop.permute.xlu0 %663 }
 0x127   :  { %555 = vmatprep.mubr.f32.mxu1 %v1150_v5 }
 0x12a   :  { %883 = vmatmul.mubr.msk.f32.gmra.mrb[16].mxu1 %vm450_vm1, %v425_v30 }
 0x12b   :  { %744 = vmatprep.mubr.f32.mxu1 %v1150_v5 }
 0x1eb   :  { %v952_v34 = vpop.f32.mrb[14].mxu0 }
 0x1ec   :  { %v634_v35 = vadd.f32 %v952_v34, %v438_v33  ;;  %v628_v36 = vpop.f32.mrb[15].mxu0 }
 0x1ed   :  { %v629_v37 = vadd.f32 %v628_v36, %v433_v12 }
 0x1ee   :  { %v652_v39 = vmax.f32 %v634_v35, 0.0 }
 0x1ef   :  { %v649_v40 = vmax.f32 %v629_v37, 0.0  ;;  %v955_v41 = vpop.f32.mrb[16].mxu0 }
 0x1f0   :  { %v644_v42 = vadd.f32 %v955_v41, %v448_v38  ;;  %v638_v43 = vpop.f32.mrb[17].mxu0 }
 0x1f1   :  { %v1014_v44 = vpack.c.bf16 %v652_v39, %v649_v40  ;;  %v639_v45 = vadd.f32 %v638_v43, %v443_v32  ;;  %v539_v46 = vpop.f32.mrb[10].mxu1 }
 0x1f2   :  { %v658_v47 = vmax.f32 %v644_v42, 0.0  ;;  %v541_v48 = vpop.f32.mrb[11].mxu1  ;;  %v540_v50 = vadd.f32 %v539_v46, %v433_v12 }
 0x1f3   :  { %v655_v5 = vmax.f32 %v639_v45, 0.0  ;;  %1015 = vmatpush3.bf16.msra.mxu0 %v1014_v44  ;;  %v542_v52 = vadd.f32 %v541_v48, %v433_v12 }
 0x1f4   :  { %1016 = vmatprep.subr.bf16.mxu0 %v1153_v31  ;;  %v647_v58 = vmax.f32 %v540_v50, 0.0 }
 0x1f5   :  { %v1017_v51 = vpack.c.bf16 %v658_v47, %v655_v5  ;;  %v545_v53 = vpop.f32.mrb[12].mxu1  ;;  %v648_v60 = vmax.f32 %v542_v52, 0.0 }
 0x1f6   :  { %v546_v54 = vadd.f32 %v545_v53, %v438_v33  ;;  %v547_v55 = vpop.f32.mrb[13].mxu1 }
 0x1f7   :  { %1019 = vmatpush3.bf16.msk.msra.mxu0 %vm1313_vm7, %v1017_v51  ;;  %v548_v56 = vadd.f32 %v547_v55, %v438_v33 }
 0x1f8   :  { %v650_v59 = vmax.f32 %v546_v54, 0.0 }
 0x1f9   :  { %v651_v61 = vmax.f32 %v548_v56, 0.0  ;;  %v551_v62 = vpop.f32.mrb[14].mxu1 }
 0x1fa   :  { %v1005_v63 = vpack.c.bf16 %v650_v59, %v647_v58  ;;  %965 = vmatmul.mubr.msk.f32.vlgmr.msra.gmra.mrb[18].mxu0 %vm666_vm8, %v659_v57  ;;  %v553_v0 = vpop.f32.mrb[15].mxu1  ;;  %v552_v2 = vadd.f32 %v551_v62, %v443_v32 }
 0x1fb   :  { %v1003_v1 = vpack.c.bf16 %v651_v61, %v648_v60  ;;  %v554_v3 = vadd.f32 %v553_v0, %v443_v32 }
 0x1fc   :  { %v653_v9 = vmax.f32 %v552_v2, 0.0 }
 0x1fd   :  { %v557_v4 = vpop.f32.mrb[16].mxu1  ;;  %1004 = vmatprep.subr.bf16.mxu1 %v1003_v1  ;;  %v654_v11 = vmax.f32 %v554_v3, 0.0 }
 0x1fe   :  { %v558_v6 = vadd.f32 %v557_v4, %v448_v38  ;;  %v559_v7 = vpop.f32.mrb[17].mxu1  ;;  %1006 = vmatpush1.bf16.msra.mxu1 %v1005_v63 }
 0x1ff   :  { %v560_v8 = vadd.f32 %v559_v7, %v448_v38 }
 0x200   :  { %v656_v10 = vmax.f32 %v558_v6, 0.0 }
 0x201   :  { %v657_v13 = vmax.f32 %v560_v8, 0.0 }
 0x202   :  { %v1010_v14 = vpack.c.bf16 %v656_v10, %v653_v9 }
 0x203   :  { %v1007_v15 = vpack.c.bf16 %v657_v13, %v654_v11 }
 0x205   :  { %1009 = vmatprep.subr.msk.bf16.mxu1 %vm1313_vm7, %v1007_v15 }
 0x206   :  { %1012 = vmatpush1.bf16.msk.msra.mxu1 %vm1313_vm7, %v1010_v14 }
 0x209   :  { %891 = vmatmul.mubr.msk.f32.vlgmr.msra.gmra.mrb[18].mxu1 %vm666_vm8, %v659_v57 }
 0x2cd   :  { %v817_v17 = vpop.f32.mrb[18].mxu0 }
 0x2ce   :  { %v818_v18 = vadd.f32 %v817_v17, %v664_v16  ;;  %v966_v19 = vpop.f32.mrb[19].mxu0 }
 0x2d0   :  { %823 = vst [vmem:[#allocation2 + $0x10] sm:$0xff] %v818_v18 }
 0x2dc   :  { %v746_v20 = vpop.f32.mrb[18].mxu1 }
 0x2dd   :  { %v747_v21 = vadd.f32 %v746_v20, %v664_v16  ;;  %v748_v22 = vpop.f32.mrb[19].mxu1 }
 0x2de   :  { %v749_v23 = vadd.f32 %v748_v22, %v664_v16 }
 0x2df   :  { %821 = vst [vmem:[#allocation2] sm:$0xff] %v747_v21 }
 0x2e0   :  { %822 = vst [vmem:[#allocation2 + $0x8] sm:$0xff] %v749_v23 }
 0x2e1   :  { %1137 = shalt.err (!%p1134_p4)
}
 0x2e2   :  { %s1138_s13 = scalar_lea.hbm %s1346_s6, 384 }
 0x2e3   :  { %p1139_p5 = scmp.ne.s32.totalorder %s1346_s6, %s1138_s13  ;;  %p1142_p6 = scmp.lt.u32.totalorder %s1138_s13, %s1346_s6 }
 0x2e5   :  { %p1144_p7 = pnand %p1142_p6, %p1139_p5 }
 0x2e7   :  { %1147 = shalt.err (!%p1144_p7)
}
 0x2e8   :  { %833 = dma.vmem_to_hbm [thread:$0]  %s831_s9, 384, %s1346_s6, [#allocation3]  }
 0x2e9   :  { %1148 = dma.done.wait [#allocation3], 384  }
 0x2ea   :  { %1149 = vsyncadd [#allocation3], 4294966912 }
 0x2eb   :  { %837 = vsyncpa [#allocation3], 1 }

</bundles_post_ra>
